<compile_context>
chip_gen: v7x
topology: tpu7x:2x2x1
jax: 0.10.0
libtpu: 0.0.40
codegen_flags: <defaults>
</compile_context>

<pallas_src>
import math

import numpy as np
import jax
import jax.numpy as jnp
from jax import lax
from jax.experimental import pallas as pl
from jax.experimental.pallas import tpu as pltpu


def _round_up(x, m):
    return (x + m - 1) // m * m


# ----------------------------------------------------------------------------
# Pallas kernel: one matmul emits every token (special, node, edge) with
# aligned lane-dense stores; padding masked via a (tt, 1) iota + SMEM length.
# ----------------------------------------------------------------------------
def fused_token_kernel(lens_ref, comb_ref, w_ref, o_ref):
    # lens: (B,) int32 in SMEM (scalar prefetch) -- per-batch real token count
    # comb: (1, tt, K)   w: (K, Hp)   o: (1, tt, Hp)
    b = pl.program_id(0)
    j = pl.program_id(1)
    tt = o_ref.shape[1]
    emb = jnp.dot(comb_ref[0], w_ref[...],
                  preferred_element_type=jnp.float32)              # (tt, Hp)
    keep_len = lens_ref[b] + 2                                      # +graph/null
    pos = j * tt + lax.broadcasted_iota(jnp.int32, (tt, 1), 0)      # (tt, 1)
    o_ref[0] = jnp.where(pos < keep_len, emb, 0.0).astype(o_ref.dtype)


def fused_tokens_pallas(combined, lens, w_comb, tt, out_dtype=jnp.float32):
    b, tp, kdim = combined.shape
    hp = w_comb.shape[1]
    grid_spec = pltpu.PrefetchScalarGridSpec(
        num_scalar_prefetch=1,
        grid=(b, tp // tt),
        in_specs=[
            pl.BlockSpec((1, tt, kdim), lambda i, j, lens: (i, j, 0)),
            pl.BlockSpec((kdim, hp), lambda i, j, lens: (0, 0)),
        ],
        out_specs=pl.BlockSpec((1, tt, hp), lambda i, j, lens: (i, j, 0)),
    )
    return pl.pallas_call(
        fused_token_kernel,
        out_shape=jax.ShapeDtypeStruct((b, tp, hp), out_dtype),
        grid_spec=grid_spec,
        compiler_params=pltpu.CompilerParams(
            dimension_semantics=("parallel", "parallel")),
    )(lens, combined, w_comb)


# ----------------------------------------------------------------------------
# Combined-weight and combined-row builders (narrow K, single gathers).
# ----------------------------------------------------------------------------
def build_w_comb(params, hp):
    """Stack every parameter block into one (K, Hp) MXU weight.

    In production this is precomputed once per model, not per forward call.
    """
    h = params["w_atom"].shape[1]
    tab = params["order_tab"]
    w = jnp.concatenate([
        params["w_atom"],            # node features         (Din, H)
        params["w_edge"],            # edge-type one-hot     (E, H)
        params["b_atom"][None, :],   # node bias flag        (1, H)
        params["w_lap"],             # [lap_src | lap_dst]   (2k, H)
        tab[0:1],                    # const 1               (1, H)
        tab[1:2] - tab[0:1],         # order flag            (1, H)
        params["graph_token"],       # graph-token flag      (1, H)
        params["null_token"],        # null-token flag       (1, H)
    ], axis=0)
    return jnp.pad(w, ((0, 0), (0, hp - h)))      # lane-dense output columns


def build_combined(node_data, edge_types, edge_index, eigvec,
                   node_num, edge_num, lap_k, num_edges_type, tp):
    """Build the narrow (B, Tp, K) per-token rows plus index/mask outputs.

    Column layout matches build_w_comb's row layout.  Everything here is only
    K ~ Din + E + 2k + 5 floats wide, so the gathers move ~Hp/K fewer HBM
    bytes than gathering encoded Hp-wide features would.
    """
    b = len(node_num)
    din = node_data.shape[1]
    k = lap_k
    e_cols = num_edges_type
    kdim = din + e_cols + 1 + 2 * k + 2 + 2
    t_tok = max(n + e for n, e in zip(node_num, edge_num))
    n_total = int(sum(node_num))
    e_total = int(sum(edge_num))

    node_num_np = np.asarray(node_num, np.int32)
    edge_num_np = np.asarray(edge_num, np.int32)
    node_off_np = np.concatenate([[0], np.cumsum(node_num_np)[:-1]]).astype(np.int32)
    edge_off_np = np.concatenate([[0], np.cumsum(edge_num_np)[:-1]]).astype(np.int32)

    node_num_a = jnp.asarray(node_num_np)[:, None]              # (B, 1)
    seq_len = node_num_a + jnp.asarray(edge_num_np)[:, None]    # (B, 1)
    node_off = jnp.asarray(node_off_np)
    edge_off = jnp.asarray(edge_off_np)

    f32 = jnp.float32
    ones_n = jnp.ones((n_total, 1), f32)
    node_rows = jnp.concatenate([
        node_data.astype(f32),
        jnp.zeros((n_total, e_cols), f32),
        ones_n,                                  # bias flag (nodes only)
        eigvec.astype(f32), eigvec.astype(f32),  # lap_src == lap_dst for nodes
        ones_n,                                  # const -> order_tab[0]
        ones_n,                                  # order = 1 (idx0 == idx1)
        jnp.zeros((n_total, 2), f32),            # graph / null flags
    ], axis=1)                                                   # (n_total, K)

    src_l = edge_index[0].astype(jnp.int32)
    dst_l = edge_index[1].astype(jnp.int32)
    goff = jnp.asarray(np.repeat(node_off_np, edge_num_np), jnp.int32)
    lap_src = eigvec[goff + src_l].astype(f32)
    lap_dst = eigvec[goff + dst_l].astype(f32)
    ones_e = jnp.ones((e_total, 1), f32)
    edge_rows = jnp.concatenate([
        jnp.zeros((e_total, din), f32),
        jax.nn.one_hot(edge_types, e_cols, dtype=f32),
        jnp.zeros((e_total, 1), f32),            # no bias for edges
        lap_src, lap_dst,
        ones_e,                                  # const -> order_tab[0]
        (src_l == dst_l).astype(f32)[:, None],   # order flag
        jnp.zeros((e_total, 2), f32),
    ], axis=1)                                                   # (e_total, K)

    graph_row = jnp.zeros((1, kdim), f32).at[0, kdim - 2].set(1.0)
    null_row = jnp.zeros((1, kdim), f32).at[0, kdim - 1].set(1.0)
    zero_row = jnp.zeros((1, kdim), f32)
    src_table = jnp.concatenate(
        [node_rows, edge_rows, graph_row, null_row, zero_row], axis=0)
    idx_graph = n_total + e_total
    idx_null = idx_graph + 1
    idx_zero = idx_graph + 2

    pos = jnp.arange(tp, dtype=jnp.int32)[None, :]               # (1, Tp)
    tok = pos - 2                                                # token index
    is_node = (tok >= 0) & (tok < node_num_a)
    is_edge = (tok >= node_num_a) & (tok < seq_len)
    rows = jnp.where(pos == 0, idx_graph,
           jnp.where(pos == 1, idx_null,
           jnp.where(is_node, node_off[:, None] + tok,
           jnp.where(is_edge,
                     n_total + edge_off[:, None] + (tok - node_num_a),
                     idx_zero))))
    combined = src_table[rows]                                   # (B, Tp, K)

    # padded_index (B, T, 2) and padding_mask (B, 2 + T), same as reference.
    tpos = jnp.arange(t_tok, dtype=jnp.int32)[None, :]
    node_mask_t = tpos < node_num_a
    edge_mask_t = (tpos >= node_num_a) & (tpos < seq_len)
    src_pairs = jnp.concatenate(
        [jnp.stack([src_l, dst_l], axis=1), jnp.zeros((1, 2), jnp.int32)], 0)
    erow = jnp.where(edge_mask_t, edge_off[:, None] + (tpos - node_num_a),
                     e_total)
    edge_pairs = src_pairs[erow]                                 # (B, T, 2)
    tpos2 = jnp.broadcast_to(tpos[..., None], (b, t_tok, 2)).astype(jnp.int32)
    padded_index = jnp.where(node_mask_t[..., None], tpos2, edge_pairs)
    padding_mask = jnp.concatenate(
        [jnp.zeros((b, 2), bool), tpos >= seq_len], axis=1)

    return combined, padded_index, padding_mask, seq_len[:, 0].astype(jnp.int32)


# ----------------------------------------------------------------------------
# Full forward (lap_node_id=True, type_id=True, num_edges_type != -1,
# orf_node_id=False; sign_flip / eig_dropout are training-only -> no-ops)
# ----------------------------------------------------------------------------
def tokenizer_forward(params, node_data, edge_types, edge_index,
                      laplacian_pe_list, node_num, edge_num, lap_k,
                      num_edges_type, use_bf16=False):
    h = params["w_atom"].shape[1]
    hp = _round_up(h, 128)                        # lane-dense hidden dim
    max_n = max(node_num)

    # lap eigvec: pad each graph's PE to max_n columns, concat, keep first k.
    lap_eigvec = jnp.concatenate(
        [jnp.pad(lp, ((0, 0), (0, max_n - lp.shape[1])))
         for lp in laplacian_pe_list], axis=0)                 # (sum_n, max_n)
    if lap_k > lap_eigvec.shape[-1]:
        eigvec = jnp.pad(lap_eigvec,
                         ((0, 0), (0, lap_k - lap_eigvec.shape[-1])))
    else:
        eigvec = lap_eigvec[:, :lap_k]

    t_tok = max(n + e for n, e in zip(node_num, edge_num))
    tt = min(512, _round_up(2 + t_tok, 8))        # T-tile (bounded VMEM)
    tp = _round_up(2 + t_tok, tt)

    combined, padded_index, padding_mask, seq_len = build_combined(
        node_data, edge_types, edge_index, eigvec, node_num, edge_num,
        lap_k, num_edges_type, tp)

    w_comb = build_w_comb(params, hp)             # precompute-once in prod

    if use_bf16:                                  # bf16 MXU inputs (v6e/v7x)
        combined = combined.astype(jnp.bfloat16)
        w_comb = w_comb.astype(jnp.bfloat16)

    out = fused_tokens_pallas(combined, seq_len, w_comb, tt)

    # Slice off T / lane padding (no-ops when T+2 and hidden_dim are aligned).
    return out[:, :2 + t_tok, :h], padding_mask, padded_index


# ----------------------------------------------------------------------------
# Independent pure-JAX reference (Python-loop batching), for the check.
# ----------------------------------------------------------------------------
def get_batch_jax(node_feature, edge_index, edge_feature, node_num, edge_num):
    t = max(n + e for n, e in zip(node_num, edge_num))
    h = node_feature.shape[-1]
    feats, idxs, masks = [], [], []
    n_off, e_off = 0, 0
    for n, e in zip(node_num, edge_num):
        pad = t - n - e
        nf = node_feature[n_off:n_off + n]
        ef = edge_feature[e_off:e_off + e]
        fb = jnp.concatenate(
            [nf, ef, jnp.zeros((pad, h), node_feature.dtype)], axis=0)
        node_idx = jnp.arange(n, dtype=jnp.int32)
        ni = jnp.stack([node_idx, node_idx], axis=1)
        ei = edge_index[:, e_off:e_off + e].T.astype(jnp.int32)
        ib = jnp.concatenate([ni, ei, jnp.zeros((pad, 2), jnp.int32)], axis=0)
        mb = jnp.arange(t) >= (n + e)
        feats.append(fb); idxs.append(ib); masks.append(mb)
        n_off += n; e_off += e
    return jnp.stack(feats), jnp.stack(idxs), jnp.stack(masks)


def get_index_embed_jax(node_id, node_num, padded_index):
    b = len(node_num)
    max_n = max(node_num)
    k = node_id.shape[-1]
    rows, n_off = [], 0
    for n in node_num:
        block = node_id[n_off:n_off + n]
        block = jnp.concatenate(
            [block, jnp.zeros((max_n - n, k), node_id.dtype)], axis=0)
        rows.append(block); n_off += n
    padded_node_id = jnp.stack(rows)
    bidx = jnp.arange(b)[:, None, None]
    gathered = padded_node_id[bidx, padded_index]
    t = padded_index.shape[1]
    return gathered.reshape(b, t, 2 * k)


def reference_forward(params, node_data, edge_types, edge_index,
                      laplacian_pe_list, node_num, edge_num, lap_k):
    max_n = max(node_num)
    lap_eigvec = jnp.concatenate(
        [jnp.pad(lp, ((0, 0), (0, max_n - lp.shape[1])))
         for lp in laplacian_pe_list], axis=0)
    if lap_k > lap_eigvec.shape[-1]:
        eigvec = jnp.pad(lap_eigvec,
                         ((0, 0), (0, lap_k - lap_eigvec.shape[-1])))
    else:
        eigvec = lap_eigvec[:, :lap_k]
    node_feature = node_data @ params["w_atom"] + params["b_atom"]
    edge_feature = params["w_edge"][edge_types]
    padded_feature, padded_index, padding_mask = get_batch_jax(
        node_feature, edge_index, edge_feature, node_num, edge_num)
    lap_index_embed = get_index_embed_jax(eigvec, node_num, padded_index)
    out = padded_feature + lap_index_embed @ params["w_lap"]
    order = (padded_index[..., 0] == padded_index[..., 1]).astype(jnp.int32)
    out = out + params["order_tab"][order]
    out = jnp.where(padding_mask[..., None], 0.0, out)
    b, _, h = out.shape
    graph_tok = jnp.broadcast_to(params["graph_token"], (b, 1, h))
    null_tok = jnp.broadcast_to(params["null_token"], (b, 1, h))
    feat = jnp.concatenate([graph_tok, null_tok, out], axis=1)
    mask = jnp.concatenate([jnp.zeros((b, 2), dtype=bool), padding_mask], 1)
    return feat, mask, padded_index


# ----------------------------------------------------------------------------
# main
# ----------------------------------------------------------------------------
if __name__ == "__main__":
    # module hyper-params
    input_dim = 8
    hidden_dim = 32
    num_edges_type = 4
    lap_node_id_k = 4
    n_layers = 2

    # synthetic batch of 2 small graphs
    node_num = [5, 7]
    edge_num = [6, 4]

    key = jax.random.PRNGKey(0)
    keys = jax.random.split(key, 16)

    std_lin = 0.02 / math.sqrt(n_layers)
    params = {
        # Linear weights stored as (in, out); PyTorch stores (out, in).
        "w_atom": std_lin * jax.random.normal(keys[0], (input_dim, hidden_dim),
                                              jnp.float32),
        "b_atom": jnp.zeros((hidden_dim,), jnp.float32),
        "w_edge": 0.02 * jax.random.normal(keys[1], (num_edges_type, hidden_dim),
                                           jnp.float32),
        "graph_token": 0.02 * jax.random.normal(keys[2], (1, hidden_dim),
                                                jnp.float32),
        "null_token": 0.02 * jax.random.normal(keys[3], (1, hidden_dim),
                                               jnp.float32),
        "w_lap": std_lin * jax.random.normal(keys[4],
                                             (2 * lap_node_id_k, hidden_dim),
                                             jnp.float32),
        "order_tab": 0.02 * jax.random.normal(keys[5], (2, hidden_dim),
                                              jnp.float32),
    }

    node_data = jax.random.normal(keys[6], (sum(node_num), input_dim),
                                  jnp.float32)
    edge_types = jax.random.randint(keys[7], (sum(edge_num),), 0,
                                    num_edges_type)
    # per-graph local edge endpoints (as DGL g.edges() returns local ids)
    e0, e1 = [], []
    ek = keys[8]
    for n, e in zip(node_num, edge_num):
        ks, kd, ek = jax.random.split(ek, 3)
        e0.append(jax.random.randint(ks, (e,), 0, n))
        e1.append(jax.random.randint(kd, (e,), 0, n))
    edge_index = jnp.stack([jnp.concatenate(e0), jnp.concatenate(e1)])
    # laplacian_pe per graph: (n, n)
    laplacian_pe_list = [
        jax.random.normal(keys[9 + i], (n, n), jnp.float32)
        for i, n in enumerate(node_num)
    ]

    padded_feature, padding_mask, padded_index = tokenizer_forward(
        params, node_data, edge_types, edge_index, laplacian_pe_list,
        node_num, edge_num, lap_node_id_k, num_edges_type, use_bf16=False)
    padded_feature = jax.block_until_ready(padded_feature)

    ref_feat, ref_mask, ref_index = reference_forward(
        params, node_data, edge_types, edge_index, laplacian_pe_list,
        node_num, edge_num, lap_node_id_k)
    ref_feat = jax.block_until_ready(ref_feat)

    t_max = max(n + e for n, e in zip(node_num, edge_num))
    assert padded_feature.shape == (len(node_num), 2 + t_max, hidden_dim)
    assert padding_mask.shape == padded_feature.shape[:2]
    assert padded_index.shape == (len(node_num), t_max, 2)
    if not jnp.array_equal(padded_index, ref_index):
        raise AssertionError("padded_index mismatch vs JAX reference")
    if not jnp.array_equal(padding_mask, ref_mask):
        raise AssertionError("padding_mask mismatch vs JAX reference")
    if not jnp.allclose(padded_feature, ref_feat, atol=2e-3, rtol=2e-3):
        raise AssertionError("Pallas output mismatch vs JAX reference")

    print("KERNEL_OK")
</pallas_src>

<mosaic_0001>
module attributes {stable_mosaic.version = 11 : i64} {
  func.func @fused_token_kernel(%arg0: i32, %arg1: i32, %arg2: memref<2xi32, #tpu.memory_space<smem>>, %arg3: memref<1x16x25xf32, #tpu.memory_space<vmem>>, %arg4: memref<25x128xf32, #tpu.memory_space<vmem>>, %arg5: memref<1x16x128xf32, #tpu.memory_space<vmem>>) attributes {dimension_semantics = [#tpu.dimension_semantics<parallel>, #tpu.dimension_semantics<parallel>], iteration_bounds = array<i64: 2, 1>, scalar_prefetch = 1 : i64, scratch_operands = 0 : i64, tpu.core_type = #tpu.core_type<tc>, window_params = [{transform_indices = @transform_0, window_bounds = array<i64: 1, 16, 25>}, {pipeline_mode = #tpu.pipeline_mode<synchronous>, transform_indices = @transform_1, window_bounds = array<i64: 25, 128>}, {transform_indices = @transform_2, window_bounds = array<i64: 1, 16, 128>}]} {
    %c0 = arith.constant 0 : index
    %c0_0 = arith.constant 0 : index
    %c0_1 = arith.constant 0 : index
    %0 = vector.load %arg3[%c0, %c0_0, %c0_1] : memref<1x16x25xf32, #tpu.memory_space<vmem>>, vector<1x16x25xf32>
    %1 = vector.shape_cast %0 : vector<1x16x25xf32> to vector<16x25xf32>
    %c0_2 = arith.constant 0 : index
    %c0_3 = arith.constant 0 : index
    %2 = vector.load %arg4[%c0_2, %c0_3] : memref<25x128xf32, #tpu.memory_space<vmem>>, vector<25x128xf32>
    %cst = arith.constant dense<0.000000e+00> : vector<16x128xf32>
    %3 = tpu.matmul %1, %2, %cst {dimension_numbers = #tpu.dot_dimension_numbers<[1], [0], [0], [1], [0, 0, 1, 1], [], []>} : vector<16x25xf32>, vector<25x128xf32>, vector<16x128xf32> -> vector<16x128xf32>
    %4 = arith.index_cast %arg0 : i32 to index
    %5 = memref.load %arg2[%4] : memref<2xi32, #tpu.memory_space<smem>>
    %c2_i32 = arith.constant 2 : i32
    %6 = arith.addi %5, %c2_i32 : i32
    %c16_i32 = arith.constant 16 : i32
    %7 = arith.muli %arg1, %c16_i32 : i32
    %8 = tpu.iota {dimensions = array<i32: 0>} : vector<16x1xi32>
    %9 = vector.broadcast %7 : i32 to vector<16x1xi32>
    %10 = arith.addi %9, %8 : vector<16x1xi32>
    %11 = vector.broadcast %6 : i32 to vector<16x1xi32>
    %12 = arith.cmpi slt, %10, %11 : vector<16x1xi32>
    %cst_4 = arith.constant 0.000000e+00 : f32
    %13 = vector.shape_cast %12 : vector<16x1xi1> to vector<16x1xi1>
    %14 = vector.broadcast %13 : vector<16x1xi1> to vector<16x128xi1>
    %15 = vector.broadcast %cst_4 : f32 to vector<16x128xf32>
    %16 = arith.select %14, %3, %15 : vector<16x128xi1>, vector<16x128xf32>
    %c0_5 = arith.constant 0 : index
    %c0_6 = arith.constant 0 : index
    %c0_7 = arith.constant 0 : index
    %17 = vector.load %arg5[%c0_5, %c0_6, %c0_7] : memref<1x16x128xf32, #tpu.memory_space<vmem>>, vector<1x16x128xf32>
    %18 = vector.shape_cast %17 : vector<1x16x128xf32> to vector<16x128xf32>
    %19 = vector.shape_cast %16 : vector<16x128xf32> to vector<1x16x128xf32>
    tpu.vector_store %arg5[%c0_5, %c0_6, %c0_7], %19 {strides = array<i32>} : memref<1x16x128xf32, #tpu.memory_space<vmem>>, vector<1x16x128xf32>,
    return
  }
  func.func @transform_0(%arg0: i32, %arg1: i32, %arg2: memref<2xi32, #tpu.memory_space<smem>>) -> (i32, i32, i32) {
    %c0_i32 = arith.constant 0 : i32
    %c0_i32_0 = arith.constant 0 : i32
    return %arg0, %arg1, %c0_i32 : i32, i32, i32
  }
  func.func @transform_1(%arg0: i32, %arg1: i32, %arg2: memref<2xi32, #tpu.memory_space<smem>>) -> (i32, i32) {
    %c0_i32 = arith.constant 0 : i32
    %c0_i32_0 = arith.constant 0 : i32
    %c0_i32_1 = arith.constant 0 : i32
    return %c0_i32, %c0_i32_0 : i32, i32
  }
  func.func @transform_2(%arg0: i32, %arg1: i32, %arg2: memref<2xi32, #tpu.memory_space<smem>>) -> (i32, i32, i32) {
    %c0_i32 = arith.constant 0 : i32
    %c0_i32_0 = arith.constant 0 : i32
    return %arg0, %arg1, %c0_i32 : i32, i32, i32
  }
}

</mosaic_0001>

<bundles_post_ra>
// kernel: tpu_custom_call.1
= control target key start
LH: loop header
LB: loop body
LE: loop exit
PB: predicated region body
PF: predicated region fallthrough
CT: control target
= control target key end

     0   :  { %s986_s0 = inlined_call_operand.hbm [shape: s32[2], index: 0, kind: input, shape index: {}]   ;;  %s987_s1 = inlined_call_operand.hbm [shape: f32[2,16,25], index: 1, kind: input, shape index: {}]   ;;  %s988_s2 = inlined_call_operand.hbm [shape: f32[25,128], index: 2, kind: input, shape index: {}]   ;;  %s989_s3 = inlined_call_operand.hbm [shape: f32[2,16,128], index: 3, kind: output, shape index: {}]  }
   0x1   :  { %s555_s14 = scalar_lea.hbm %s986_s0, 16 }
   0x2   :  { %p556_p0 = scmp.ne.s32.totalorder %s986_s0, %s555_s14  ;;  %p559_p1 = scmp.lt.u32.totalorder %s555_s14, %s986_s0 }
   0x4   :  { %p561_p2 = pnand %p559_p1, %p556_p0 }
   0x6   :  { %564 = shalt.err (!%p561_p2)  }
   0x7   :  { %s713_s19 = smov [#allocation3]  }
   0x8   :  { %9 = dma.hbm_to_smem %s986_s0, 16, %s713_s19, [#allocation2] }
   0x9   :  { %675 = dma.done.wait [#allocation2], 16 }
   0xa   :  { %676 = vsyncadd [#allocation2], 4294967280 }
   0xb   :  { %11 = sfence }
   0xc   :  { %12 = vsyncpa [#allocation5], 0 }
   0xd   :  { %14 = vsyncpa [#allocation5 + $0x1], 0 }
   0xe   :  { %15 = vsyncpa [#allocation8], 0 }
   0xf   :  { %16 = vsyncpa [#allocation6], 0 }
  0x10   :  { %18 = vsyncpa [#allocation6 + $0x1], 0  ;;  %s754_s22 = smov 0   ;;  %s756_s23 = smov 0  }
  0x11   :  { %s758_s24 = smov 0   ;;  %s760_s25 = smov 0  }
  0x12   :  { %s762_s26 = smov 0   ;;  %s764_s27 = smov 0  }
  0x13 LB: > { %s427_s0 = sadd.s32 4294967295, %s711_s27   ;;  %s428_s28 = sadd.s32 4294967294, %s711_s27   ;;  %s711_s27 = sphi %s764_s27, %s24_s27   ;;  %s707_s26 = sphi %s762_s26, %s1013_s26   ;;  %s703_s25 = sphi %s760_s25, %s1012_s25   ;;  %s699_s24 = sphi %s758_s24, %s1011_s24   ;;  %s695_s23 = sphi %s756_s23, %s1010_s23   ;;  %s691_s22 = sphi %s754_s22, %s1009_s22  }
  0x14   : > { %p58_p3 = scmp.ne.s32.totalorder %s695_s23, %s691_s22  ;;  %p788_p4 = scmp.eq.s32.totalorder %s427_s0, 0 }
  0x15   : > { %p792_p5 = scmp.eq.s32.totalorder %s427_s0, 1  ;;  %p111_p6 = scmp.eq.s32.totalorder %s428_s28, 1 }
  0x16   : > { %s994_s29 = scalar_select %p788_p4, 1, 0 }
  0x17   : > { %s995_s30 = scalar_select %p792_p5, 1, 0 }
  0x18   : > { %p798_p7 = por %p788_p4, %p58_p3  ;;  %p429_p8 = scmp.ge.s32.totalorder %s711_s27, 1 }
  0x19   : > { %p803_p9 = por %p111_p6, %p58_p3  ;;  %p118_p10 = scmp.lt.s32.totalorder %s711_s27, 3 }
  0x1a   : > { %s996_s4 = scalar_select %p798_p7, 1, 0 }
  0x1b   : > { %s997_s5 = scalar_select %p803_p9, 1, 0 }
  0x1c   : > { %p808_p11 = pnand %p429_p8, %p118_p10  ;;  %s714_s7 = smov [#allocation7]  }
  0x1d   : > { %s130_s8 = sshll.u32 %s714_s7, 4  ;;  %s36_s10 = sadd.s32 1, %s707_s26  ;;  %s131_s8 = int_to_ptr.vmem [resolvable:$true] %s130_s8 }
  0x1e   : > { %s998_s6 = scalar_select %p808_p11, 1, 0 }
  0x1f   : > { %p484_p12 = pneg %p808_p11  ;;  %s565_s13 = scalar_lea.hbm %s988_s2, 512 }
  0x20   : > { %p566_p1 = scmp.ne.s32.totalorder %s988_s2, %s565_s13  ;;  %p572_p8 = scmp.lt.u32.totalorder %s565_s13, %s988_s2 }
  0x21   : > { %p817_p0 = pnand %p484_p12, %p788_p4 }
  0x23   : > { %p567_p2 = pneg %p817_p0 }
  0x25   : > { %p568_p3 = pnand %p567_p2, %p566_p1 }
  0x27   : > { %p569_p6 = pneg %p568_p3 }
  0x29   : > { %p574_p10 = pnand %p572_p8, %p569_p6 }
  0x2b   : > { %577 = shalt.err (!%p574_p10)
}
  0x2c   : > { %s578_s18 = scalar_lea.vmem %s131_s8, 512  ;;  %p586_p4 = scmp.lt.s32.totalorder %s131_s8, %s131_s8 }
  0x2d   : > { %p579_p12 = scmp.ne.s32.totalorder %s131_s8, %s578_s18  ;;  %p587_p7 = scmp.lt.s32.totalorder %s578_s18, %s578_s18 }
  0x2f   : > { %p581_p13 = pnand %p579_p12, %p567_p2  ;;  %p588_p11 = por %p587_p7, %p586_p4 }
  0x31   : > { %p582_p9 = pneg %p581_p13 }
  0x33   : > { %p589_p5 = pnand %p588_p11, %p582_p9 }
  0x35   : > { %592 = shalt.err (!%p589_p5)
}
  0x36   : > { %s715_s19 = smov 128   ;;  %s716_s20 = smov 8  }
  0x37   : > { %487 = dma.hbm_to_vmem [thread:$0]  (!%p817_p0), %s988_s2, 512, %s131_s8, [#allocation8], %s715_s19, %s715_s19, %s716_s20  }
  0x38   : > { %p38_p4 = scmp.ge.s32.totalorder %s36_s10, 2  ;;  %s45_s28 = sadd.s32 1, %s699_s24 }
  0x39   : > { %p52_p5 = scmp.ne.s32.totalorder %s699_s24, %s695_s23  ;;  %p53_p7 = scmp.eq.s32.totalorder %s711_s27, 0 }
  0x3a   : > { %s1015_s10 = smov (%p38_p4, %s36_s10), 0  ;;  %p1001_p11 = scmp.ne.s32.totalorder %s995_s30, 0 }
  0x3b   : > { %p847_p9 = por %p53_p7, %p52_p5  ;;  %s40_s11 = ssub.s32 %s707_s26, %s1015_s10 }
  0x3c   : > { %p853_p13 = por %p1001_p11, %p52_p5  ;;  %p497_p1 = scmp.lt.s32.totalorder %s711_s27, 2 }
  0x3d   : > { %p43_p0 = scmp.eq.s32.totalorder %s40_s11, 0  ;;  %s144_s8 = sand.u32 1, %s699_s24  }
  0x3e   : > { %s432_s12 = sshll.u32 %s144_s8, 4  ;;  %s447_s14 = sshll.u32 %s707_s26, 8 }
  0x3f   : > { %s862_s13 = scalar_select %p43_p0, %s699_s24, %s45_s28  }
  0x40   : > { %s868_s17 = scalar_lea.hbm %s987_s1, %s447_s14  ;;  %s148_s30 = scalar_lea.vmem [#allocation4], %s432_s12 }
  0x41   : > { %s157_s18 = sshll.u32 %s148_s30, 4  ;;  %p874_p2 = pnand %p497_p1, %p847_p9  ;;  %s870_s18 = int_to_ptr.vmem [resolvable:$true] %s157_s18 }
  0x42   : > { %s878_s0 = scalar_lea.sflag [#allocation5], %s144_s8  ;;  %s593_s28 = scalar_lea.hbm %s868_s17, 256 }
  0x43   : > { %p594_p3 = scmp.ne.s32.totalorder %s868_s17, %s593_s28  ;;  %p595_p6 = pneg %p874_p2 }
  0x44   : > { %s598_s7 = scalar_lea.hbm %s987_s1, 512  ;;  %p599_p12 = scmp.lt.u32.totalorder %s868_s17, %s987_s1 }
  0x45   : > { %p596_p8 = pnand %p595_p6, %p594_p3  ;;  %p600_p4 = scmp.lt.u32.totalorder %s598_s7, %s593_s28 }
  0x46   : > { %p602_p7 = scmp.lt.u32.totalorder %s593_s28, %s868_s17 }
  0x47   : > { %p597_p10 = pneg %p596_p8  ;;  %p601_p5 = por %p600_p4, %p599_p12 }
  0x49   : > { %p603_p9 = por %p602_p7, %p601_p5 }
  0x4b   : > { %p604_p11 = pnand %p603_p9, %p597_p10 }
  0x4d   : > { %607 = shalt.err (!%p604_p11)
}
  0x4e   : > { %s608_s8 = scalar_lea.vmem %s870_s18, 256  ;;  %s717_s16 = smov [#allocation4]  }
  0x4f   : > { %p609_p1 = scmp.ne.s32.totalorder %s870_s18, %s608_s8  ;;  %s613_s30 = sshll.u32 %s717_s16, 4  ;;  %s614_s30 = int_to_ptr.vmem [resolvable:$false] %s613_s30 }
  0x50   : > { %s615_s11 = scalar_lea.vmem %s614_s30, 512  ;;  %p616_p8 = scmp.lt.s32.totalorder %s870_s18, %s614_s30 }
  0x51   : > { %p611_p0 = pnand %p609_p1, %p595_p6  ;;  %p617_p12 = scmp.lt.s32.totalorder %s615_s11, %s608_s8 }
  0x53   : > { %p612_p3 = pneg %p611_p0  ;;  %p618_p4 = por %p617_p12, %p616_p8 }
  0x55   : > { %p619_p5 = pnand %p618_p4, %p612_p3 }
  0x57   : > { %622 = shalt.err (!%p619_p5)
}
  0x58   : > { %491 = dma.hbm_to_vmem [thread:$0]  (!%p874_p2), %s868_s17, 256, %s870_s18, %s878_s0, %s715_s19, %s715_s19, %s716_s20  }
  0x59   : > { %p1004_p6 = scmp.ne.s32.totalorder %s998_s6, 0 }
  0x5a   : > { %s912_s28 = sand.u32 (!%p1004_p6), 1, %s695_s23   ;;  %p1005_p10 = scmp.ne.s32.totalorder (!%p1004_p6), %s996_s4, 0 }
  0x5b   : > { %169 = sbr.rel (%p1004_p6) target bundleno = 342 (0x156), region = 28  ;;  %s436_s12 = sshll.u32 (!%p1004_p6), %s912_s28, 4 }
  0x5c   : > { %s172_s7 = scalar_lea.sflag (!%p1004_p6), [#allocation5], %s912_s28  ;;  %s175_s21 = scalar_lea.vmem (!%p1004_p6), [#allocation4], %s436_s12 }
  0x62   : > { %678 = dma.done.wait (%p1005_p10), %s172_s7, 256  }
  0x63   : > { %680 = vsyncadd (%p1005_p10), %s172_s7, 4294967040  ;;  %p1006_p2 = scmp.ne.s32.totalorder %s994_s29, 0 }
  0x65   : > { %682 = dma.done.wait (%p1006_p2), [#allocation8], 512  }
  0x66   : > { %684 = vsyncadd (%p1006_p2), [#allocation8], 4294966784  ;;  %vm215_vm0 = vcmask 1040384   ;;  %vm208_vm1 = vcmask 203776   ;;  %v204_v0 = vld [vmem:[#allocation7] sm:$0xff]  ;;  %v205_v1 = vld [vmem:[#allocation7 + $0x8] sm:$0xff]  ;;  %v297_v8 = vlaneseq }
  0x67   : > { %v206_v2 = vld [vmem:[#allocation7 + $0x10] sm:$0xff]  ;;  %v466_v3 = vpack.c.bf16 %v205_v1, %v204_v0  ;;  %v207_v4 = vld [vmem:[#allocation7 + $0x18] sm:$0x1]  ;;  %vm718_vm2 = vmmov 1   ;;  %s294_s29 = sld [smem:[#allocation3 + %s703_s25]]  ;;  %s199_s6 = scalar_lea.vmem [#allocation9], %s436_s12 }
  0x68   : > { %v202_v5 = vld [vmem:[%s175_s21] sm:$0xff]  ;;  %v470_v6 = vpack.c.bf16 %v207_v4, %v206_v2  ;;  %vm471_vm3 = vmpackc.low %vm215_vm0, %vm718_vm2  ;;  %v203_v7 = vld [vmem:[%s175_s21 + $0x8] sm:$0xff]  ;;  %v298_v9 = vshrl.u32 %v297_v8, 7  ;;  %s330_s19 = sshll.u32 %s199_s6, 4  ;;  %s448_s20 = sshll.u32 %s703_s25, 8  ;;  %s932_s19 = int_to_ptr.vmem [resolvable:$true] %s330_s19 }
  0x69   : > { %463 = vmatprep.mubr.msk.f32.mxu0 %vm208_vm1, %v202_v5  ;;  %467 = vmatprep.subr.bf16.mxu0 %v466_v3  ;;  %s937_s0 = scalar_lea.hbm %s989_s3, %s448_s20  ;;  %s315_s14 = scalar_lea.sflag [#allocation6], %s912_s28 }
  0x6a   : > { %469 = vmatpush3.bf16.msra.mxu0 %v466_v3  ;;  %v299_v10 = vadd.s32 8, %v298_v9  ;;  %s623_s25 = scalar_lea.vmem %s932_s19, 256  ;;  %s719_s15 = smov [#allocation9]  }
  0x6b   : > { %472 = vmatprep.subr.msk.bf16.mxu0 %vm471_vm3, %v470_v6  ;;  %p624_p7 = scmp.ne.s32.totalorder %s932_s19, %s623_s25  ;;  %s627_s8 = sshll.u32 %s719_s15, 4  ;;  %s628_s8 = int_to_ptr.vmem [resolvable:$false] %s627_s8 }
  0x6c   : > { %s629_s16 = scalar_lea.vmem %s628_s8, 512  ;;  %p630_p1 = scmp.lt.s32.totalorder %s932_s19, %s628_s8 }
  0x6d   : > { %s295_s4 = sadd.s32 2, %s294_s29  ;;  %p625_p9 = pnand %p624_p7, %p853_p13 }
  0x6e   : > { %475 = vmatpush3.bf16.msk.msra.mxu0 %vm471_vm3, %v470_v6  ;;  %v303_v11 = vstv %s295_s4  ;;  %p631_p0 = scmp.lt.s32.totalorder %s629_s16, %s623_s25 }
  0x6f   : > { %vm305_vm4 = vcmp.lt.s32.totalorder %v299_v10, %v303_v11  ;;  %vm304_vm5 = vcmp.lt.s32.totalorder %v298_v9, %v303_v11  ;;  %p626_p11 = pneg %p625_p9 }
  0x70   : > { %p632_p3 = por %p631_p0, %p630_p1 }
  0x71   : > { %464 = vmatmul.mubr.msk.f32.vlgmr.msra.gmra.mrb[0].mxu0 %vm208_vm1, %v203_v7 }
  0x72   : > { %p633_p8 = pnand %p632_p3, %p626_p11 }
 0x144   : > { %v465_v12 = vpop.f32.mrb[0].mxu0 }
 0x145   : > { %v311_v13 = vsel %vm305_vm4, %v465_v12, 0.0  ;;  %v285_v14 = vpop.f32.mrb[1].mxu0 }
 0x146   : > { %313 = vst [vmem:[%s199_s6 + $0x8] sm:$0xff] %v311_v13  ;;  %v310_v15 = vsel %vm304_vm5, %v285_v14, 0.0 }
 0x147   : > { %312 = vst [vmem:[%s199_s6] sm:$0xff] %v310_v15 }
 0x148   : > { %636 = shalt.err (!%p633_p8)
}
 0x149   : > { %s637_s30 = scalar_lea.hbm %s937_s0, 256  ;;  %s641_s7 = scalar_lea.hbm %s989_s3, 512 }
 0x14a   : > { %p638_p12 = scmp.ne.s32.totalorder %s937_s0, %s637_s30  ;;  %p642_p6 = scmp.lt.u32.totalorder %s937_s0, %s989_s3 }
 0x14b   : > { %p643_p10 = scmp.lt.u32.totalorder %s641_s7, %s637_s30  ;;  %p645_p7 = scmp.lt.u32.totalorder %s637_s30, %s937_s0 }
 0x14c   : > { %p639_p4 = pnand %p638_p12, %p853_p13 }
 0x14d   : > { %p644_p2 = por %p643_p10, %p642_p6 }
 0x14e   : > { %p640_p5 = pneg %p639_p4 }
 0x14f   : > { %p646_p9 = por %p645_p7, %p644_p2 }
 0x151   : > { %p647_p11 = pnand %p646_p9, %p640_p5 }
 0x153   : > { %650 = shalt.err (!%p647_p11)
}
 0x154   : > { %s720_s4 = smov 128   ;;  %s721_s6 = smov 8  }
 0x155   : > { %482 = dma.vmem_to_hbm [thread:$0]  (%p853_p13), %s932_s19, 256, %s937_s0, %s315_s14, %s720_s4, %s720_s4, %s721_s6  }
 0x156 PF: > { %s345_s20 = sand.u32 1, %s691_s22   ;;  %p1007_p1 = scmp.ne.s32.totalorder %s997_s5, 0 }
 0x157   : > { %p1008_p0 = scmp.ge.s32.totalorder %s711_s27, 2  ;;  %s346_s17 = scalar_lea.sflag [#allocation6], %s345_s20 }
 0x159   : > { %p493_p3 = pnand %p1008_p0, %p1007_p1 }
 0x15b   : > { %686 = dma.done.wait (!%p493_p3), %s346_s17, 256  }
 0x15c   : > { %688 = vsyncadd (!%p493_p3), %s346_s17, 4294967040  ;;  %s24_s27 = sadd.s32 1, %s711_s27   ;;  %s1009_s22 = smov %s695_s23 }
 0x15d   : > { %p21_p8 = scmp.ge.s32.totalorder %s24_s27, 4   ;;  %s1010_s23 = smov %s699_s24 }
 0x15e   : > { %s1011_s24 = smov %s862_s13  ;;  %s1012_s25 = smov %s707_s26 }
 0x15f   : > { %s1013_s26 = smov %s1015_s10  ;;  %23 = sbr.rel (!%p21_p8) target bundleno = 19 (0x13), region = 77 }
 0x166   :  { %351 = vsyncpa [#allocation5], 1 }
 0x167   :  { %353 = vsyncpa [#allocation5 + $0x1], 1 }
 0x168   :  { %354 = vsyncpa [#allocation8], 1 }
 0x169   :  { %355 = vsyncpa [#allocation6], 1 }
 0x16a   :  { %357 = vsyncpa [#allocation6 + $0x1], 1 }

</bundles_post_ra>
